<compile_context>
chip_gen: v6e
topology: v6e:2x2x1
jax: 0.10.0
libtpu: 0.0.40
codegen_flags: <defaults>
</compile_context>

<pallas_src>
import functools
import math

import jax
import jax.numpy as jnp
from jax.experimental import pallas as pl
from jax.experimental.pallas import tpu as pltpu


# ------------------------------ Pallas kernels ------------------------------

def _mfvi_mlp_sample_kernel(*refs, num_layers, dims_in):
    """sample=True path.  One Monte-Carlo weight sample per grid step.

    refs = (x_ref,                                  # (B, in0)
            p_ref_0 .. p_ref_{L-1},                 # (2, in+1, out): [mean_aug, std_aug]
            eps_ref_0 .. eps_ref_{L-1},             # (1, in+1, out) per-sample N(0,1)
            o_ref)                                  # (1, B, out)
    """
    x_ref = refs[0]
    p_refs = refs[1:1 + num_layers]
    eps_refs = refs[1 + num_layers:1 + 2 * num_layers]
    o_ref = refs[-1]

    h = x_ref[...]                                              # (B, in0) f32
    for l in range(num_layers):
        din = dims_in[l]
        # Sampled augmented matrix [W^T ; b] = mean + eps * std   (in+1, out)
        wb = p_refs[l][0] + eps_refs[l][0] * p_refs[l][1]
        # (B, in) @ (in, out) on the MXU, f32 accumulate; last row is the bias.
        h = jax.lax.dot_general(
            h, wb[:din, :], dimension_numbers=(((1,), (0,)), ((), ())),
            preferred_element_type=jnp.float32) + wb[din:, :]
        if l < num_layers - 1:
            h = jnp.maximum(h, 0.0)                             # ReLU (hidden only)
    o_ref[0] = h.astype(o_ref.dtype)


def _mfvi_mlp_mean_kernel(*refs, num_layers, dims_in):
    """sample=False path (pure mean forward, no eps / std inputs).

    refs = (x_ref, m_ref_0 .. m_ref_{L-1}, o_ref), m_ref = (in+1, out) [W_mean^T ; b_mean]
    """
    x_ref = refs[0]
    m_refs = refs[1:1 + num_layers]
    o_ref = refs[-1]

    h = x_ref[...]
    for l in range(num_layers):
        din = dims_in[l]
        mb = m_refs[l][...]                                     # (in+1, out)
        h = jax.lax.dot_general(
            h, mb[:din, :], dimension_numbers=(((1,), (0,)), ((), ())),
            preferred_element_type=jnp.float32) + mb[din:, :]
        if l < num_layers - 1:
            h = jnp.maximum(h, 0.0)
    o_ref[...] = h.astype(o_ref.dtype)


# ------------------------------ Packing helpers ------------------------------

def pack_mfvi_params(params, task_id=0):
    """One-time repack of PyTorch-layout params into the kernel layout.

    Per layer a single (2, in+1, out) f32 buffer:
      [0] = [weight_mean^T ; bias_mean]                              (mean, augmented)
      [1] = [exp(0.5*weight_log_var)^T ; exp(0.5*bias_log_var)]      (std,  augmented)
    Weights end up in MXU-native (K=in, N=out) layout, the bias is the last
    row, and std is precomputed so the kernel has no exp in the per-sample loop.
    """
    layers = list(params["layers"]) + [params["output_layers"][task_id]]
    packed = []
    for layer in layers:
        mean_aug = jnp.concatenate(
            [layer["weight_mean"].T, layer["bias_mean"][None, :]], axis=0)
        std_aug = jnp.concatenate(
            [jnp.exp(0.5 * layer["weight_log_var"]).T,
             jnp.exp(0.5 * layer["bias_log_var"])[None, :]], axis=0)
        packed.append(jnp.stack([mean_aug, std_aug], axis=0).astype(jnp.float32))
    return packed


def _sample_eps(key, packed, num_samples):
    """One N(0,1) draw per parameter per MC sample, in the packed layout."""
    keys = jax.random.split(key, len(packed))
    return [jax.random.normal(k, (num_samples,) + p.shape[1:], jnp.float32)
            for k, p in zip(keys, packed)]


# ------------------------------ Forward wrapper ------------------------------

def mfvi_nn_forward(packed, x, key=None, sample=True, num_samples=1):
    """Equivalent of MFVI_NN.forward(x, task_id, sample) on pre-packed params.

    sample=True  -> (num_samples, B, out): one MC weight sample per grid step.
    sample=False -> (B, out): deterministic mean forward.
    """
    num_layers = len(packed)
    dims_in = tuple(int(p.shape[1]) - 1 for p in packed)
    dims_out = tuple(int(p.shape[2]) for p in packed)
    batch = x.shape[0]
    out_dim = dims_out[-1]
    itemsize = jnp.dtype(x.dtype).itemsize

    if sample:
        eps_list = _sample_eps(key, packed, num_samples)

        # Advisory cost estimate (no transcendentals: std precomputed at pack time).
        flops = 0
        bytes_accessed = x.size * itemsize + num_samples * batch * out_dim * itemsize
        for din, dout, p in zip(dims_in, dims_out, packed):
            flops += num_samples * (2 * (din + 1) * dout          # mean + eps*std
                                    + 2 * batch * din * dout      # matmul
                                    + 2 * batch * dout)           # bias + relu
            bytes_accessed += p.size * 4 + num_samples * (din + 1) * dout * 4
        cost = pl.CostEstimate(flops=int(flops), transcendentals=0,
                               bytes_accessed=int(bytes_accessed))

        # Grid over MC samples. Params use constant index_maps -> VMEM-resident
        # (single DMA); eps and output move one small block per step.
        inputs = [x]
        in_specs = [pl.BlockSpec((batch, dims_in[0]), lambda s: (0, 0))]
        for p in packed:
            in_specs.append(pl.BlockSpec(p.shape, lambda s: (0, 0, 0)))
            inputs.append(p)
        for e in eps_list:
            in_specs.append(pl.BlockSpec((1,) + e.shape[1:], lambda s: (s, 0, 0)))
            inputs.append(e)

        kernel = functools.partial(_mfvi_mlp_sample_kernel,
                                   num_layers=num_layers, dims_in=dims_in)

        # NOTE: at realistic sizes (hidden >= 2048) add an out_features tile
        # axis and set vmem_limit_bytes (v7x has only 64 MiB VMEM), and cast
        # only the dot operands to bf16 on v6e/v7x.  f32 everywhere is kept
        # here so the identical code also lowers on v5e (no bf16 VPU/EUP).
        return pl.pallas_call(
            kernel,
            grid=(num_samples,),
            out_shape=jax.ShapeDtypeStruct((num_samples, batch, out_dim), x.dtype),
            in_specs=in_specs,
            out_specs=pl.BlockSpec((1, batch, out_dim), lambda s: (s, 0, 0)),
            compiler_params=pltpu.CompilerParams(
                dimension_semantics=("parallel",)),
            cost_estimate=cost,
        )(*inputs)

    # ---- sample=False: pure mean forward, single launch, everything in VMEM.
    means = [p[0] for p in packed]                               # (in+1, out) each
    flops = sum(2 * batch * din * dout + 2 * batch * dout
                for din, dout in zip(dims_in, dims_out))
    bytes_accessed = (x.size + batch * out_dim) * itemsize \
        + sum(m.size * 4 for m in means)
    cost = pl.CostEstimate(flops=int(flops), transcendentals=0,
                           bytes_accessed=int(bytes_accessed))
    kernel = functools.partial(_mfvi_mlp_mean_kernel,
                               num_layers=num_layers, dims_in=dims_in)
    return pl.pallas_call(
        kernel,
        out_shape=jax.ShapeDtypeStruct((batch, out_dim), x.dtype),
        cost_estimate=cost,
    )(x, *means)


# --------------------------- Parameter building ----------------------------

def init_mfvi_layer(key, in_features, out_features):
    """Re-implementation of MFVI_Layer.reset_parameters() (PyTorch layout)."""
    kw, kb = jax.random.split(key)
    # kaiming_uniform_(a=sqrt(5)) on a (out, in) matrix -> bound = 1/sqrt(fan_in)
    bound_w = 1.0 / math.sqrt(in_features)
    weight_mean = jax.random.uniform(
        kw, (out_features, in_features), jnp.float32, -bound_w, bound_w)
    weight_log_var = jnp.full((out_features, in_features), -6.0, jnp.float32)
    bound_b = 1.0 / math.sqrt(in_features)
    bias_mean = jax.random.uniform(
        kb, (out_features,), jnp.float32, -bound_b, bound_b)
    bias_log_var = jnp.full((out_features,), -6.0, jnp.float32)
    return dict(weight_mean=weight_mean, weight_log_var=weight_log_var,
                bias_mean=bias_mean, bias_log_var=bias_log_var)


def init_mfvi_nn(key, input_size, hidden_sizes, output_size, num_tasks=1):
    params = {"layers": [], "output_layers": []}
    in_dim = input_size
    for h_dim in hidden_sizes:
        key, sub = jax.random.split(key)
        params["layers"].append(init_mfvi_layer(sub, in_dim, h_dim))
        in_dim = h_dim
    n_heads = 1 if num_tasks == 1 else num_tasks
    for _ in range(n_heads):
        key, sub = jax.random.split(key)
        params["output_layers"].append(init_mfvi_layer(sub, in_dim, output_size))
    return params


# --------------------------------- Main ------------------------------------

if __name__ == "__main__":
    root = jax.random.PRNGKey(0)
    k_params, k_x, k_eps, k_eps2 = jax.random.split(root, 4)

    # Small MLP consistent with MFVI_NN(input_size, hidden_sizes, output_size)
    batch = 8
    input_size = 32
    hidden_sizes = [64, 64]
    output_size = 16
    num_samples = 4            # Monte-Carlo weight samples per launch

    params = init_mfvi_nn(k_params, input_size, hidden_sizes, output_size, num_tasks=1)
    packed = pack_mfvi_params(params, task_id=0)   # one-time layout change
    x = jax.random.normal(k_x, (batch, input_size), jnp.float32)

    fwd = jax.jit(mfvi_nn_forward, static_argnames=("sample", "num_samples"))

    # Sampled (Bayesian) forward: S MC weight samples in one fused launch.
    out = jax.block_until_ready(
        fwd(packed, x, k_eps, sample=True, num_samples=num_samples))
    assert out.shape == (num_samples, batch, output_size), out.shape
    assert bool(jnp.isfinite(out).all())

    # Determinism for a fixed key, variation across keys.
    out_same = jax.block_until_ready(
        fwd(packed, x, k_eps, sample=True, num_samples=num_samples))
    out_diff = jax.block_until_ready(
        fwd(packed, x, k_eps2, sample=True, num_samples=num_samples))
    assert bool(jnp.allclose(out, out_same))
    assert not bool(jnp.allclose(out, out_diff))

    # Reference check against the original (PyTorch-style) math with the SAME eps.
    eps_list = _sample_eps(k_eps, packed, num_samples)
    layers = list(params["layers"]) + [params["output_layers"][0]]
    refs = []
    for s in range(num_samples):
        h = x
        for l, (layer, e) in enumerate(zip(layers, eps_list)):
            din = layer["weight_mean"].shape[1]
            eps_w = e[s, :din, :].T                 # back to (out, in) layout
            eps_b = e[s, din, :]
            w = layer["weight_mean"] + eps_w * jnp.exp(0.5 * layer["weight_log_var"])
            b = layer["bias_mean"] + eps_b * jnp.exp(0.5 * layer["bias_log_var"])
            h = h @ w.T + b
            if l < len(layers) - 1:
                h = jnp.maximum(h, 0.0)
        refs.append(h)
    ref_sampled = jnp.stack(refs)
    assert bool(jnp.allclose(out, ref_sampled, atol=1e-3, rtol=1e-3))

    # sample=False path: deterministic mean forward vs plain JAX.
    out_det = jax.block_until_ready(fwd(packed, x, None, sample=False))
    h_ref = x
    for layer in params["layers"]:
        h_ref = jnp.maximum(h_ref @ layer["weight_mean"].T + layer["bias_mean"], 0.0)
    ol = params["output_layers"][0]
    ref_mean = h_ref @ ol["weight_mean"].T + ol["bias_mean"]
    assert out_det.shape == (batch, output_size)
    assert bool(jnp.allclose(out_det, ref_mean, atol=1e-3, rtol=1e-3))

    print("KERNEL_OK")
</pallas_src>

<mosaic_0001>
module attributes {stable_mosaic.version = 11 : i64} {
  func.func @_mfvi_mlp_sample_kernel(%arg0: i32, %arg1: memref<8x32xf32, #tpu.memory_space<vmem>>, %arg2: memref<2x33x64xf32, #tpu.memory_space<vmem>>, %arg3: memref<2x65x64xf32, #tpu.memory_space<vmem>>, %arg4: memref<2x65x16xf32, #tpu.memory_space<vmem>>, %arg5: memref<1x33x64xf32, #tpu.memory_space<vmem>>, %arg6: memref<1x65x64xf32, #tpu.memory_space<vmem>>, %arg7: memref<1x65x16xf32, #tpu.memory_space<vmem>>, %arg8: memref<1x8x16xf32, #tpu.memory_space<vmem>>) attributes {dimension_semantics = [#tpu.dimension_semantics<parallel>], iteration_bounds = array<i64: 4>, scalar_prefetch = 0 : i64, scratch_operands = 0 : i64, tpu.core_type = #tpu.core_type<tc>, window_params = [{pipeline_mode = #tpu.pipeline_mode<synchronous>, transform_indices = @transform_0, window_bounds = array<i64: 8, 32>}, {pipeline_mode = #tpu.pipeline_mode<synchronous>, transform_indices = @transform_1, window_bounds = array<i64: 2, 33, 64>}, {pipeline_mode = #tpu.pipeline_mode<synchronous>, transform_indices = @transform_2, window_bounds = array<i64: 2, 65, 64>}, {pipeline_mode = #tpu.pipeline_mode<synchronous>, transform_indices = @transform_3, window_bounds = array<i64: 2, 65, 16>}, {transform_indices = @transform_4, window_bounds = array<i64: 1, 33, 64>}, {transform_indices = @transform_5, window_bounds = array<i64: 1, 65, 64>}, {transform_indices = @transform_6, window_bounds = array<i64: 1, 65, 16>}, {transform_indices = @transform_7, window_bounds = array<i64: 1, 8, 16>}]} {
    %c0 = arith.constant 0 : index
    %c0_0 = arith.constant 0 : index
    %0 = vector.load %arg1[%c0, %c0_0] : memref<8x32xf32, #tpu.memory_space<vmem>>, vector<8x32xf32>
    %c0_1 = arith.constant 0 : index
    %c0_2 = arith.constant 0 : index
    %c0_3 = arith.constant 0 : index
    %1 = vector.load %arg2[%c0_1, %c0_2, %c0_3] : memref<2x33x64xf32, #tpu.memory_space<vmem>>, vector<1x33x64xf32>
    %2 = vector.shape_cast %1 : vector<1x33x64xf32> to vector<33x64xf32>
    %c0_4 = arith.constant 0 : index
    %c0_5 = arith.constant 0 : index
    %c0_6 = arith.constant 0 : index
    %3 = vector.load %arg5[%c0_4, %c0_5, %c0_6] : memref<1x33x64xf32, #tpu.memory_space<vmem>>, vector<1x33x64xf32>
    %4 = vector.shape_cast %3 : vector<1x33x64xf32> to vector<33x64xf32>
    %c1 = arith.constant 1 : index
    %c0_7 = arith.constant 0 : index
    %c0_8 = arith.constant 0 : index
    %5 = vector.load %arg2[%c1, %c0_7, %c0_8] : memref<2x33x64xf32, #tpu.memory_space<vmem>>, vector<1x33x64xf32>
    %6 = vector.shape_cast %5 : vector<1x33x64xf32> to vector<33x64xf32>
    %7 = arith.mulf %4, %6 : vector<33x64xf32>
    %8 = arith.addf %2, %7 : vector<33x64xf32>
    %9 = vector.extract_strided_slice %8 {offsets = [0, 0], sizes = [32, 64], strides = [1, 1]} : vector<33x64xf32> to vector<32x64xf32>
    %cst = arith.constant dense<0.000000e+00> : vector<8x64xf32>
    %10 = tpu.matmul %0, %9, %cst {dimension_numbers = #tpu.dot_dimension_numbers<[1], [0], [0], [1], [0, 0, 1, 1], [], []>} : vector<8x32xf32>, vector<32x64xf32>, vector<8x64xf32> -> vector<8x64xf32>
    %11 = vector.extract_strided_slice %8 {offsets = [32, 0], sizes = [1, 64], strides = [1, 1]} : vector<33x64xf32> to vector<1x64xf32>
    %12 = vector.broadcast %11 : vector<1x64xf32> to vector<8x64xf32>
    %13 = arith.addf %10, %12 : vector<8x64xf32>
    %cst_9 = arith.constant 0.000000e+00 : f32
    %14 = vector.broadcast %cst_9 : f32 to vector<8x64xf32>
    %15 = arith.maximumf %13, %14 : vector<8x64xf32>
    %c0_10 = arith.constant 0 : index
    %c0_11 = arith.constant 0 : index
    %c0_12 = arith.constant 0 : index
    %16 = vector.load %arg3[%c0_10, %c0_11, %c0_12] : memref<2x65x64xf32, #tpu.memory_space<vmem>>, vector<1x65x64xf32>
    %17 = vector.shape_cast %16 : vector<1x65x64xf32> to vector<65x64xf32>
    %c0_13 = arith.constant 0 : index
    %c0_14 = arith.constant 0 : index
    %c0_15 = arith.constant 0 : index
    %18 = vector.load %arg6[%c0_13, %c0_14, %c0_15] : memref<1x65x64xf32, #tpu.memory_space<vmem>>, vector<1x65x64xf32>
    %19 = vector.shape_cast %18 : vector<1x65x64xf32> to vector<65x64xf32>
    %c1_16 = arith.constant 1 : index
    %c0_17 = arith.constant 0 : index
    %c0_18 = arith.constant 0 : index
    %20 = vector.load %arg3[%c1_16, %c0_17, %c0_18] : memref<2x65x64xf32, #tpu.memory_space<vmem>>, vector<1x65x64xf32>
    %21 = vector.shape_cast %20 : vector<1x65x64xf32> to vector<65x64xf32>
    %22 = arith.mulf %19, %21 : vector<65x64xf32>
    %23 = arith.addf %17, %22 : vector<65x64xf32>
    %24 = vector.extract_strided_slice %23 {offsets = [0, 0], sizes = [64, 64], strides = [1, 1]} : vector<65x64xf32> to vector<64x64xf32>
    %cst_19 = arith.constant dense<0.000000e+00> : vector<8x64xf32>
    %25 = tpu.matmul %15, %24, %cst_19 {dimension_numbers = #tpu.dot_dimension_numbers<[1], [0], [0], [1], [0, 0, 1, 1], [], []>} : vector<8x64xf32>, vector<64x64xf32>, vector<8x64xf32> -> vector<8x64xf32>
    %26 = vector.extract_strided_slice %23 {offsets = [64, 0], sizes = [1, 64], strides = [1, 1]} : vector<65x64xf32> to vector<1x64xf32>
    %27 = vector.broadcast %26 : vector<1x64xf32> to vector<8x64xf32>
    %28 = arith.addf %25, %27 : vector<8x64xf32>
    %cst_20 = arith.constant 0.000000e+00 : f32
    %29 = vector.broadcast %cst_20 : f32 to vector<8x64xf32>
    %30 = arith.maximumf %28, %29 : vector<8x64xf32>
    %c0_21 = arith.constant 0 : index
    %c0_22 = arith.constant 0 : index
    %c0_23 = arith.constant 0 : index
    %31 = vector.load %arg4[%c0_21, %c0_22, %c0_23] : memref<2x65x16xf32, #tpu.memory_space<vmem>>, vector<1x65x16xf32>
    %32 = vector.shape_cast %31 : vector<1x65x16xf32> to vector<65x16xf32>
    %c0_24 = arith.constant 0 : index
    %c0_25 = arith.constant 0 : index
    %c0_26 = arith.constant 0 : index
    %33 = vector.load %arg7[%c0_24, %c0_25, %c0_26] : memref<1x65x16xf32, #tpu.memory_space<vmem>>, vector<1x65x16xf32>
    %34 = vector.shape_cast %33 : vector<1x65x16xf32> to vector<65x16xf32>
    %c1_27 = arith.constant 1 : index
    %c0_28 = arith.constant 0 : index
    %c0_29 = arith.constant 0 : index
    %35 = vector.load %arg4[%c1_27, %c0_28, %c0_29] : memref<2x65x16xf32, #tpu.memory_space<vmem>>, vector<1x65x16xf32>
    %36 = vector.shape_cast %35 : vector<1x65x16xf32> to vector<65x16xf32>
    %37 = arith.mulf %34, %36 : vector<65x16xf32>
    %38 = arith.addf %32, %37 : vector<65x16xf32>
    %39 = vector.extract_strided_slice %38 {offsets = [0, 0], sizes = [64, 16], strides = [1, 1]} : vector<65x16xf32> to vector<64x16xf32>
    %cst_30 = arith.constant dense<0.000000e+00> : vector<8x16xf32>
    %40 = tpu.matmul %30, %39, %cst_30 {dimension_numbers = #tpu.dot_dimension_numbers<[1], [0], [0], [1], [0, 0, 1, 1], [], []>} : vector<8x64xf32>, vector<64x16xf32>, vector<8x16xf32> -> vector<8x16xf32>
    %41 = vector.extract_strided_slice %38 {offsets = [64, 0], sizes = [1, 16], strides = [1, 1]} : vector<65x16xf32> to vector<1x16xf32>
    %42 = vector.broadcast %41 : vector<1x16xf32> to vector<8x16xf32>
    %43 = arith.addf %40, %42 : vector<8x16xf32>
    %c0_31 = arith.constant 0 : index
    %c0_32 = arith.constant 0 : index
    %c0_33 = arith.constant 0 : index
    %44 = vector.load %arg8[%c0_31, %c0_32, %c0_33] : memref<1x8x16xf32, #tpu.memory_space<vmem>>, vector<1x8x16xf32>
    %45 = vector.shape_cast %44 : vector<1x8x16xf32> to vector<8x16xf32>
    %46 = vector.shape_cast %43 : vector<8x16xf32> to vector<1x8x16xf32>
    tpu.vector_store %arg8[%c0_31, %c0_32, %c0_33], %46 {strides = array<i32>} : memref<1x8x16xf32, #tpu.memory_space<vmem>>, vector<1x8x16xf32>,
    return
  }
  func.func @transform_0(%arg0: i32) -> (i32, i32) {
    %c0_i32 = arith.constant 0 : i32
    %c0_i32_0 = arith.constant 0 : i32
    %c0_i32_1 = arith.constant 0 : i32
    return %c0_i32, %c0_i32_0 : i32, i32
  }
  func.func @transform_1(%arg0: i32) -> (i32, i32, i32) {
    %c0_i32 = arith.constant 0 : i32
    %c0_i32_0 = arith.constant 0 : i32
    %c0_i32_1 = arith.constant 0 : i32
    %c0_i32_2 = arith.constant 0 : i32
    return %c0_i32, %c0_i32_0, %c0_i32_1 : i32, i32, i32
  }
  func.func @transform_2(%arg0: i32) -> (i32, i32, i32) {
    %c0_i32 = arith.constant 0 : i32
    %c0_i32_0 = arith.constant 0 : i32
    %c0_i32_1 = arith.constant 0 : i32
    %c0_i32_2 = arith.constant 0 : i32
    return %c0_i32, %c0_i32_0, %c0_i32_1 : i32, i32, i32
  }
  func.func @transform_3(%arg0: i32) -> (i32, i32, i32) {
    %c0_i32 = arith.constant 0 : i32
    %c0_i32_0 = arith.constant 0 : i32
    %c0_i32_1 = arith.constant 0 : i32
    %c0_i32_2 = arith.constant 0 : i32
    return %c0_i32, %c0_i32_0, %c0_i32_1 : i32, i32, i32
  }
  func.func @transform_4(%arg0: i32) -> (i32, i32, i32) {
    %c0_i32 = arith.constant 0 : i32
    %c0_i32_0 = arith.constant 0 : i32
    %c0_i32_1 = arith.constant 0 : i32
    return %arg0, %c0_i32, %c0_i32_0 : i32, i32, i32
  }
  func.func @transform_5(%arg0: i32) -> (i32, i32, i32) {
    %c0_i32 = arith.constant 0 : i32
    %c0_i32_0 = arith.constant 0 : i32
    %c0_i32_1 = arith.constant 0 : i32
    return %arg0, %c0_i32, %c0_i32_0 : i32, i32, i32
  }
  func.func @transform_6(%arg0: i32) -> (i32, i32, i32) {
    %c0_i32 = arith.constant 0 : i32
    %c0_i32_0 = arith.constant 0 : i32
    %c0_i32_1 = arith.constant 0 : i32
    return %arg0, %c0_i32, %c0_i32_0 : i32, i32, i32
  }
  func.func @transform_7(%arg0: i32) -> (i32, i32, i32) {
    %c0_i32 = arith.constant 0 : i32
    %c0_i32_0 = arith.constant 0 : i32
    %c0_i32_1 = arith.constant 0 : i32
    return %arg0, %c0_i32, %c0_i32_0 : i32, i32, i32
  }
}

</mosaic_0001>

<bundles_post_ra>
// kernel: mfvi_nn_forward.1
= control target key start
LH: loop header
LB: loop body
LE: loop exit
PB: predicated region body
PF: predicated region fallthrough
CT: control target
= control target key end

     0   :  { %12 = vsyncpa [#allocation3], 0  ;;  %s1333_s0 = inlined_call_operand.vmem [shape: f32[8,32], index: 0, kind: input, shape index: {}]   ;;  %s1334_s1 = inlined_call_operand.vmem [shape: f32[2,33,64], index: 1, kind: input, shape index: {}]   ;;  %s1335_s2 = inlined_call_operand.vmem [shape: f32[2,65,64], index: 2, kind: input, shape index: {}]   ;;  %s1336_s3 = inlined_call_operand.vmem [shape: f32[2,65,16], index: 3, kind: input, shape index: {}]   ;;  %s1337_s4 = inlined_call_operand.vmem [shape: f32[4,33,64], index: 4, kind: input, shape index: {}]   ;;  %s1338_s5 = inlined_call_operand.vmem [shape: f32[4,65,64], index: 5, kind: input, shape index: {}]   ;;  %s1339_s6 = inlined_call_operand.vmem [shape: f32[4,65,16], index: 6, kind: input, shape index: {}]   ;;  %s1340_s7 = inlined_call_operand.hbm [shape: f32[4,8,16], index: 7, kind: output, shape index: {}]  }
   0x1   :  { %14 = vsyncpa [#allocation3 + $0x1], 0  ;;  %s1028_s24 = smov 0   ;;  %s1030_s25 = smov 0  }
   0x2   :  { %s1032_s26 = smov 0   ;;  %s1034_s27 = smov 0  }
   0x3 LB: > { %s1049_s28 = sadd.s32 4294967295, %s983_s27   ;;  %s770_s29 = sadd.s32 4294967294, %s983_s27   ;;  %s983_s27 = sphi %s1034_s27, %s1348_s27   ;;  %s979_s26 = sphi %s1032_s26, %s1347_s26   ;;  %s975_s25 = sphi %s1030_s25, %s1346_s25   ;;  %s971_s24 = sphi %s1028_s24, %s1345_s24  }
   0x4   : > { %s1053_s30 = sadd.s32 1, %s983_s27   ;;  %s189_s8 = sadd.s32 1, %s979_s26 }
   0x5   : > { %s186_s9 = ssub.s32 %s983_s27, %s1053_s30  ;;  %p199_p0 = scmp.ne.s32.totalorder %s979_s26, %s975_s25 }
   0x6   : > { %p187_p1 = scmp.eq.s32.totalorder %s186_s9, 0  ;;  %p200_p2 = scmp.eq.s32.totalorder %s1049_s28, 3 }
   0x7   : > { %p205_p3 = scmp.ne.s32.totalorder %s975_s25, %s971_s24  ;;  %p206_p4 = scmp.eq.s32.totalorder %s770_s29, 3 }
   0x8   : > { %s1064_s10 = scalar_select %p187_p1, %s979_s26, %s189_s8  }
   0x9   : > { %p1066_p5 = por %p200_p2, %p199_p0  ;;  %p1070_p6 = por %p206_p4, %p205_p3 }
   0xa   : > { %p773_p7 = scmp.ge.s32.totalorder %s983_s27, 1  ;;  %p260_p8 = scmp.lt.s32.totalorder %s983_s27, 5 }
   0xc   : > { %p261_p9 = pnand %p773_p7, %p260_p8 }
   0xd   : > { %p302_p10 = scmp.lt.s32.totalorder (!%p261_p9), %s1049_s28, 3  ;;  %s299_s8 = sand.u32 (!%p261_p9), 1, %s975_s25  }
   0xe   : > { %264 = sbr.rel (%p261_p9) target bundleno = 638 (0x27e), region = 48  ;;  %s774_s19 = sshll.u32 (!%p261_p9), %s299_s8, 3 }
   0xf   : > { %s674_s21 = scalar_lea.sflag (!%p261_p9), [#allocation3], %s299_s8 }
  0x13   : > { %v985_v0 = vmov 0.0   ;;  %vm986_vm0 = vmmov 0   ;;  %s1081_s13 = scalar_select %p302_p10, %s1049_s28, 3  ;;  %v781_v1 = vld [vmem:[%s1334_s1 + $0x40] sm:$0xff]  ;;  %v780_v2 = vld [vmem:[%s1334_s1 + $0x38] sm:$0xff]  ;;  %v320_v4 = vld [vmem:[%s1334_s1 + $0x10] sm:$0xff] }
  0x14   : > { %831 = vmatprep.subr.mxu0 %v985_v0  ;;  %839 = vmatprep.mubr.msk.f32.mxu0 %vm986_vm0, %v985_v0  ;;  %v321_v3 = vld [vmem:[%s1334_s1 + $0x18] sm:$0xff]  ;;  %v779_v5 = vld [vmem:[%s1334_s1 + $0x30] sm:$0xff]  ;;  %v778_v6 = vld [vmem:[%s1334_s1 + $0x28] sm:$0xff]  ;;  %vm348_vm1 = vcmask 261120   ;;  %vm473_vm2 = vcmask 523264   ;;  %vm671_vm3 = vcmask 130048  }
  0x15   : > { %842 = vmatprep.subr.mxu1 %v985_v0  ;;  %858 = vmatprep.mubr.msk.f32.mxu1 %vm986_vm0, %v985_v0  ;;  %s880_s14 = smul.u32 40, %s1081_s13  ;;  %v791_v7 = vld [vmem:[%s1335_s2 + $0x80] sm:$0xff]  ;;  %v430_v8 = vld [vmem:[%s1335_s2 + $0x38] sm:$0xff]  ;;  %v429_v9 = vld [vmem:[%s1335_s2 + $0x30] sm:$0xff] }
  0x16   : > { %v790_v10 = vld [vmem:[%s1335_s2 + $0x78] sm:$0xff]  ;;  %v789_v11 = vld [vmem:[%s1335_s2 + $0x70] sm:$0xff]  ;;  %v788_v12 = vld [vmem:[%s1335_s2 + $0x68] sm:$0xff]  ;;  %s1343_s17 = smul.u32 72, %s1081_s13 }
  0x17   : > { %s1112_s20 = scalar_lea.vmem %s1337_s4, %s880_s14  ;;  %v319_v22 = vld [vmem:[%s1334_s1 + $0x8] sm:$0xff]  ;;  %v787_v33 = vld [vmem:[%s1335_s2 + $0x60] sm:$0xff]  ;;  %v426_v43 = vld [vmem:[%s1335_s2 + $0x18] sm:$0xff]  ;;  %s1344_s15 = smul.u32 72, %s1081_s13 }
  0x18   : > { %s1134_s22 = scalar_lea.vmem %s1338_s5, %s1343_s17  ;;  %v326_v13 = vld [vmem:[%s1112_s20 + $0x18] sm:$0xff]  ;;  %v325_v14 = vld [vmem:[%s1112_s20 + $0x10] sm:$0xff]  ;;  %v324_v15 = vld [vmem:[%s1112_s20 + $0x8] sm:$0xff]  ;;  %s805_s14 = sshll.u32 %s1049_s28, 7 }
  0x19   : > { %v337_v16 = vmul.f32 %v781_v1, %v326_v13  ;;  %v336_v17 = vmul.f32 %v780_v2, %v325_v14  ;;  %v335_v18 = vmul.f32 %v779_v5, %v324_v15  ;;  %v323_v19 = vld [vmem:[%s1112_s20] sm:$0xff]  ;;  %v439_v20 = vld [vmem:[%s1134_s22 + $0x38] sm:$0xff]  ;;  %v438_v21 = vld [vmem:[%s1134_s22 + $0x30] sm:$0xff]  ;;  %s1204_s16 = scalar_lea.vmem %s1339_s6, %s1344_s15  ;;  %s301_s17 = scalar_lea.vmem [#allocation2], %s774_s19 }
  0x1a   : > { %v458_v23 = vmul.f32 %v791_v7, %v439_v20  ;;  %v457_v24 = vmul.f32 %v790_v10, %v438_v21  ;;  %v437_v25 = vld [vmem:[%s1134_s22 + $0x28] sm:$0xff]  ;;  %v436_v26 = vld [vmem:[%s1134_s22 + $0x20] sm:$0xff]  ;;  %v334_v29 = vmul.f32 %v778_v6, %v323_v19  ;;  %v435_v32 = vld [vmem:[%s1134_s22 + $0x18] sm:$0xff]  ;;  %s687_s18 = sshll.u32 %s301_s17, 4  ;;  %s1298_s13 = scalar_lea.hbm %s1340_s7, %s805_s14  ;;  %s688_s18 = int_to_ptr.vmem [resolvable:$true] %s687_s18 }
  0x1b   : > { %v342_v27 = vadd.f32 %v337_v16, %v321_v3  ;;  %v341_v28 = vadd.f32 %v336_v17, %v320_v4  ;;  %v428_v30 = vld [vmem:[%s1335_s2 + $0x28] sm:$0xff]  ;;  %v456_v31 = vmul.f32 %v789_v11, %v437_v25  ;;  %v318_v34 = vld [vmem:[%s1334_s1] sm:$0xff]  ;;  %v455_v37 = vmul.f32 %v788_v12, %v436_v26  ;;  %v434_v47 = vld [vmem:[%s1134_s22 + $0x10] sm:$0xff]  ;;  %s923_s23 = scalar_lea.vmem %s688_s18, 128  ;;  %s987_s28 = smov [#allocation2]  }
  0x1c   : > { %v467_v35 = vadd.f32 %v458_v23, %v430_v8  ;;  %v466_v36 = vadd.f32 %v457_v24, %v429_v9  ;;  %v340_v38 = vadd.f32 %v335_v18, %v319_v22  ;;  %v427_v39 = vld [vmem:[%s1335_s2 + $0x20] sm:$0xff]  ;;  %v454_v41 = vmul.f32 %v787_v33, %v435_v32  ;;  %v786_v48 = vld [vmem:[%s1335_s2 + $0x58] sm:$0xff]  ;;  %v425_v50 = vld [vmem:[%s1335_s2 + $0x10] sm:$0xff]  ;;  %p924_p11 = scmp.ne.s32.totalorder %s688_s18, %s923_s23 }
  0x1d   : > { %832 = vmatpush3.msra.mxu0 %v342_v27  ;;  %v465_v40 = vadd.f32 %v456_v31, %v428_v30  ;;  %v339_v42 = vadd.f32 %v334_v29, %v318_v34  ;;  %v464_v44 = vadd.f32 %v455_v37, %v427_v39  ;;  %v317_v45 = vld [vmem:[%s1333_s0] sm:$0xff]  ;;  %v453_v49 = vmul.f32 %v786_v48, %v434_v47  ;;  %v433_v51 = vld [vmem:[%s1134_s22 + $0x8] sm:$0xff]  ;;  %v785_v52 = vld [vmem:[%s1335_s2 + $0x50] sm:$0xff] }
  0x1e   : > { %833 = vmatprep.subr.mxu0 %v985_v0  ;;  %843 = vmatpush3.msra.mxu1 %v467_v35  ;;  %v463_v46 = vadd.f32 %v454_v41, %v426_v43  ;;  %v452_v54 = vmul.f32 %v785_v52, %v433_v51  ;;  %v424_v55 = vld [vmem:[%s1335_s2 + $0x8] sm:$0xff]  ;;  %v432_v56 = vld [vmem:[%s1134_s22] sm:$0xff]  ;;  %v555_v62 = vld [vmem:[%s1336_s3 + $0x38] sm:$0xff]  ;;  %v344_v24 = vlaneseq  ;;  %p925_p12 = pnand %p924_p11, %p1066_p5 }
  0x1f   : > { %834 = vmatpush3.msra.mxu0 %v341_v28  ;;  %844 = vmatprep.subr.mxu1 %v985_v0  ;;  %v462_v53 = vadd.f32 %v453_v49, %v425_v50  ;;  %v784_v57 = vld [vmem:[%s1335_s2 + $0x48] sm:$0xff]  ;;  %v423_v60 = vld [vmem:[%s1335_s2] sm:$0xff]  ;;  %v564_v63 = vld [vmem:[%s1204_s16 + $0x38] sm:$0xff] }
  0x20   : > { %835 = vmatprep.subr.mxu0 %v985_v0  ;;  %845 = vmatpush3.msra.mxu1 %v466_v36  ;;  %v461_v58 = vadd.f32 %v452_v54, %v424_v55  ;;  %v451_v59 = vmul.f32 %v784_v57, %v432_v56  ;;  %v801_v1 = vld [vmem:[%s1336_s3 + $0x80] sm:$0xff]  ;;  %v554_v3 = vld [vmem:[%s1336_s3 + $0x30] sm:$0xff]  ;;  %v800_v5 = vld [vmem:[%s1336_s3 + $0x78] sm:$0xff]  ;;  %v345_v28 = vshrl.u32 %v344_v24, 7  ;;  %p926_p13 = pneg %p925_p12 }
  0x21   : > { %836 = vmatpush3.msra.mxu0 %v340_v38  ;;  %846 = vmatprep.subr.mxu1 %v985_v0  ;;  %v583_v2 = vmul.f32 %v801_v1, %v564_v63  ;;  %v563_v4 = vld [vmem:[%s1204_s16 + $0x30] sm:$0xff]  ;;  %v553_v7 = vld [vmem:[%s1336_s3 + $0x28] sm:$0xff]  ;;  %v561_v12 = vld [vmem:[%s1204_s16 + $0x20] sm:$0xff] }
  0x22   : > { %837 = vmatprep.subr.mxu0 %v985_v0  ;;  %847 = vmatpush3.msra.mxu1 %v465_v40  ;;  %v460_v61 = vadd.f32 %v451_v59, %v423_v60  ;;  %v582_v6 = vmul.f32 %v800_v5, %v563_v4  ;;  %v562_v8 = vld [vmem:[%s1204_s16 + $0x28] sm:$0xff]  ;;  %v799_v9 = vld [vmem:[%s1336_s3 + $0x70] sm:$0xff]  ;;  %v552_v15 = vld [vmem:[%s1336_s3 + $0x20] sm:$0xff]  ;;  %v346_v31 = vsub.s32 0, %v345_v28 }
  0x23   : > { %838 = vmatpush3.msra.mxu0 %v339_v42  ;;  %848 = vmatprep.subr.mxu1 %v985_v0  ;;  %v592_v10 = vadd.f32 %v583_v2, %v555_v62  ;;  %v581_v11 = vmul.f32 %v799_v9, %v562_v8  ;;  %v798_v13 = vld [vmem:[%s1336_s3 + $0x68] sm:$0xff]  ;;  %v560_v17 = vld [vmem:[%s1204_s16 + $0x18] sm:$0xff]  ;;  %v797_v18 = vld [vmem:[%s1336_s3 + $0x60] sm:$0xff] }
  0x24   : > { %840 = vmatmul.mubr.msk.f32.vlgmr.msra.gmra.mxu0 %vm348_vm1, %v317_v45  ;;  %849 = vmatpush3.msra.mxu1 %v464_v44  ;;  %v591_v14 = vadd.f32 %v582_v6, %v554_v3  ;;  %v580_v16 = vmul.f32 %v798_v13, %v561_v12  ;;  %v579_v20 = vmul.f32 %v797_v18, %v560_v17  ;;  %v551_v21 = vld [vmem:[%s1336_s3 + $0x18] sm:$0xff]  ;;  %v327_v25 = vld [vmem:[%s1112_s20 + $0x20] sm:$0x1]  ;;  %v782_v26 = vld [vmem:[%s1334_s1 + $0x48] sm:$0x1] }
  0x25   : > { %850 = vmatprep.subr.mxu1 %v985_v0  ;;  %861 = vmatprep.subr.mxu0 %v985_v0  ;;  %v590_v19 = vadd.f32 %v581_v11, %v553_v7  ;;  %v338_v27 = vmul.f32 %v782_v26, %v327_v25  ;;  %v322_v29 = vld [vmem:[%s1334_s1 + $0x20] sm:$0x1]  ;;  %v559_v37 = vld [vmem:[%s1204_s16 + $0x10] sm:$0xff]  ;;  %v796_v38 = vld [vmem:[%s1336_s3 + $0x58] sm:$0xff] }
  0x26   : > { %851 = vmatpush3.msra.mxu1 %v463_v46  ;;  %877 = vmatprep.mubr.msk.f32.mxu0 %vm986_vm0, %v985_v0  ;;  %v589_v22 = vadd.f32 %v580_v16, %v552_v15  ;;  %v588_v23 = vadd.f32 %v579_v20, %v551_v21  ;;  %v578_v39 = vmul.f32 %v796_v38, %v559_v37  ;;  %v550_v40 = vld [vmem:[%s1336_s3 + $0x10] sm:$0xff]  ;;  %v558_v41 = vld [vmem:[%s1204_s16 + $0x8] sm:$0xff]  ;;  %v557_v46 = vld [vmem:[%s1204_s16] sm:$0xff] }
  0x27   : > { %852 = vmatprep.subr.mxu1 %v985_v0  ;;  %862 = vmatpush3.msra.mxu0 %v592_v10  ;;  %v343_v30 = vadd.f32 %v338_v27, %v322_v29  ;;  %v795_v42 = vld [vmem:[%s1336_s3 + $0x50] sm:$0xff]  ;;  %v549_v45 = vld [vmem:[%s1336_s3 + $0x8] sm:$0xff]  ;;  %v548_v50 = vld [vmem:[%s1336_s3] sm:$0xff] }
  0x28   : > { %853 = vmatpush3.msra.mxu1 %v462_v53  ;;  %863 = vmatprep.subr.mxu0 %v985_v0  ;;  %v587_v43 = vadd.f32 %v578_v39, %v550_v40  ;;  %v577_v44 = vmul.f32 %v795_v42, %v558_v41  ;;  %v794_v47 = vld [vmem:[%s1336_s3 + $0x48] sm:$0xff]  ;;  %v440_v52 = vld [vmem:[%s1134_s22 + $0x40] sm:$0x1]  ;;  %s927_s22 = sshll.u32 %s987_s28, 4  ;;  %s928_s22 = int_to_ptr.vmem [resolvable:$false] %s927_s22 }
  0x29   : > { %854 = vmatprep.subr.mxu1 %v985_v0  ;;  %864 = vmatpush3.msra.mxu0 %v591_v14  ;;  %v347_v32 = vrot.slane %v343_v30, %v346_v31  ;;  %v576_v49 = vmul.f32 %v794_v47, %v557_v46  ;;  %v792_v53 = vld [vmem:[%s1335_s2 + $0x88] sm:$0x1]  ;;  %v431_v55 = vld [vmem:[%s1335_s2 + $0x40] sm:$0x1]  ;;  %s929_s29 = scalar_lea.vmem %s928_s22, 256  ;;  %p930_p0 = scmp.lt.s32.totalorder %s688_s18, %s928_s22 }
  0x2a   : > { %855 = vmatpush3.msra.mxu1 %v461_v58  ;;  %865 = vmatprep.subr.mxu0 %v985_v0  ;;  %v586_v48 = vadd.f32 %v577_v44, %v549_v45  ;;  %v459_v54 = vmul.f32 %v792_v53, %v440_v52  ;;  %v802_v62 = vld [vmem:[%s1336_s3 + $0x88] sm:$0x1]  ;;  %v556_v1 = vld [vmem:[%s1336_s3 + $0x40] sm:$0x1]  ;;  %p931_p1 = scmp.lt.s32.totalorder %s929_s29, %s923_s23 }
  0x2b   : > { %856 = vmatprep.subr.mxu1 %v985_v0  ;;  %866 = vmatpush3.msra.mxu0 %v590_v19  ;;  %v585_v51 = vadd.f32 %v576_v49, %v548_v50 }
  0x2c   : > { %857 = vmatpush3.msra.mxu1 %v460_v61  ;;  %867 = vmatprep.subr.mxu0 %v985_v0  ;;  %v468_v56 = vadd.f32 %v459_v54, %v431_v55  ;;  %p932_p2 = por %p931_p1, %p930_p0 }
  0x2d   : > { %868 = vmatpush3.msra.mxu0 %v589_v22 }
  0x2e   : > { %869 = vmatprep.subr.mxu0 %v985_v0  ;;  %v472_v57 = vrot.slane %v468_v56, %v346_v31  ;;  %p933_p3 = pnand %p932_p2, %p926_p13 }
  0x2f   : > { %870 = vmatpush3.msra.mxu0 %v588_v23 }
  0x30   : > { %871 = vmatprep.subr.mxu0 %v985_v0 }
  0x31   : > { %872 = vmatpush3.msra.mxu0 %v587_v43 }
  0x32   : > { %873 = vmatprep.subr.mxu0 %v985_v0 }
  0x33   : > { %874 = vmatpush3.msra.mxu0 %v586_v48 }
  0x34   : > { %875 = vmatprep.subr.mxu0 %v985_v0  ;;  %v565_v0 = vld [vmem:[%s1204_s16 + $0x40] sm:$0x1] }
  0x35   : > { %876 = vmatpush3.msra.mxu0 %v585_v51  ;;  %v584_v63 = vmul.f32 %v802_v62, %v565_v0 }
  0x37   : > { %v593_v2 = vadd.f32 %v584_v63, %v556_v1 }
  0x39   : > { %v597_v3 = vrot.slane %v593_v2, %v346_v31 }
  0xe4   : > { %v418_v33 = vpop.f32.mrf.mxu0 }
  0xe5   : > { %v419_v34 = vadd.f32 %v418_v33, %v347_v32 }
  0xe6   : > { %v841_v35 = vpop.f32.mrf.mxu0 }
  0xe7   : > { %v422_v36 = vmax.f32 %v419_v34, 0.0 }
  0xe9   : > { %859 = vmatmul.mubr.msk.f32.vlgmr.msra.gmra.mxu1 %vm473_vm2, %v422_v36 }
 0x1a9   : > { %v543_v58 = vpop.f32.mrf.mxu1 }
 0x1aa   : > { %v544_v59 = vadd.f32 %v543_v58, %v472_v57 }
 0x1ab   : > { %v860_v60 = vpop.f32.mrf.mxu1 }
 0x1ac   : > { %v547_v61 = vmax.f32 %v544_v59, 0.0 }
 0x1ae   : > { %878 = vmatmul.mubr.msk.f32.vlgmr.msra.gmra.mxu0 %vm473_vm2, %v547_v61 }
 0x26e   : > { %v667_v4 = vpop.f32.mrf.mxu0 }
 0x26f   : > { %v668_v5 = vadd.f32 %v667_v4, %v597_v3 }
 0x270   : > { %v879_v6 = vpop.f32.mrf.mxu0 }
 0x271   : > { %672 = vst.msk [vmem:[%s301_s17] sm:$0xff] %vm671_vm3, %v668_v5 }
 0x272   : > { %936 = shalt.err (!%p933_p3)
}
 0x273   : > { %s937_s9 = scalar_lea.hbm %s1298_s13, 128  ;;  %s941_s19 = scalar_lea.hbm %s1340_s7, 512 }
 0x274   : > { %p938_p4 = scmp.ne.s32.totalorder %s1298_s13, %s937_s9  ;;  %p942_p9 = scmp.lt.s32.totalorder %s1298_s13, %s1340_s7 }
 0x275   : > { %p943_p10 = scmp.lt.s32.totalorder %s941_s19, %s937_s9 }
 0x276   : > { %p939_p7 = pnand %p938_p4, %p1066_p5 }
 0x277   : > { %p944_p11 = por %p943_p10, %p942_p9 }
 0x278   : > { %p940_p8 = pneg %p939_p7 }
 0x27a   : > { %p945_p12 = pnand %p944_p11, %p940_p8 }
 0x27c   : > { %948 = shalt.err (!%p945_p12)
}
 0x27d   : > { %882 = dma.vmem_to_hbm [thread:$0]  (%p1066_p5), %s688_s18, 128, %s1298_s13, %s674_s21  }
 0x27e PF: > { %p888_p13 = scmp.ge.s32.totalorder %s983_s27, 2  ;;  %s699_s16 = sand.u32 1, %s971_s24  }
 0x27f   : > { %s700_s20 = scalar_lea.sflag [#allocation3], %s699_s16 }
 0x280   : > { %p885_p0 = pnand %p888_p13, %p1070_p6 }
 0x282   : > { %p886_p1 = pneg %p885_p0 }
 0x284   : > { %966 = dma.done.wait (%p886_p1), %s700_s20, 128  }
 0x285   : > { %968 = vsyncadd (%p886_p1), %s700_s20, 4294967168  ;;  %p17_p2 = scmp.ge.s32.totalorder %s1053_s30, 6   ;;  %s1345_s24 = smov %s975_s25 }
 0x286   : > { %s1346_s25 = smov %s979_s26  ;;  %s1347_s26 = smov %s1064_s10 }
 0x287   : > { %s1348_s27 = smov %s1053_s30  ;;  %19 = sbr.rel (!%p17_p2) target bundleno = 3 (0x3), region = 92 }
 0x28c   :  { %705 = vsyncpa [#allocation3], 1 }
 0x28d   :  { %707 = vsyncpa [#allocation3 + $0x1], 1 }

</bundles_post_ra>
